<compile_context>
chip_gen: v5e
topology: v5e:2x2
jax: 0.10.0
libtpu: 0.0.40
codegen_flags: <defaults>
</compile_context>

<pallas_src>
import jax
import jax.numpy as jnp
from jax.experimental import pallas as pl
from jax.experimental.pallas import tpu as pltpu

_LANES = 128
_SUBLANES = 8


def _cdiv(a, b):
    return -(-a // b)


def _make_kernel(inv_hw: float):
    def kernel(q_ref, g_ref, o_ref, acc_ref):
        k = pl.program_id(1)  # reduction step (last grid axis)

        @pl.when(k == 0)
        def _init():
            acc_ref[...] = jnp.zeros_like(acc_ref)

        # (1, R_tile, 128) block; upcast so bf16 inputs accumulate in f32.
        d = q_ref[...].astype(jnp.float32) - g_ref[...].astype(jnp.float32)
        # Lane-wise partial sums: fold only the sublane-tile axis, keep 128
        # lanes live in the accumulator (no per-step cross-lane reduce, no
        # per-step narrow store).
        acc_ref[...] += jnp.sum(d * d, axis=1)  # (1, 128)

        @pl.when(k == pl.num_programs(1) - 1)
        def _finalize():
            total = jnp.sum(acc_ref[...], axis=-1, keepdims=True) * inv_hw  # (1, 1)
            o_ref[...] = jnp.broadcast_to(total[:, None, :], o_ref.shape).astype(
                o_ref.dtype
            )

    return kernel


def dualmatch_forward(q, g, *, max_rows_per_step=4096):
    """q, g: (N, C, H, W) arrays (f32 or bf16). Returns (N, 1) float32."""
    N, C, H, W = q.shape
    assert g.shape == q.shape
    D = C * H * W
    inv_hw = 1.0 / float(H * W)

    # Tiling: rows of 128 lanes, row-tile a multiple of 8 sublanes,
    # capped so 2 inputs x 2 pipeline buffers stay within ~8 MiB of VMEM.
    r_raw = _cdiv(D, _LANES)
    n_k = _cdiv(r_raw, max_rows_per_step)
    r_tile = _cdiv(_cdiv(r_raw, n_k), _SUBLANES) * _SUBLANES
    r = n_k * r_tile
    d_pad = r * _LANES

    qf = q.reshape(N, D)
    gf = g.reshape(N, D)
    if d_pad != D:
        # Zero padding is exact: (0 - 0)^2 contributes nothing to the sum.
        pad = d_pad - D
        qf = jnp.pad(qf, ((0, 0), (0, pad)))
        gf = jnp.pad(gf, ((0, 0), (0, pad)))
    q3 = qf.reshape(N, r, _LANES)
    g3 = gf.reshape(N, r, _LANES)

    itemsize = jnp.dtype(q.dtype).itemsize
    cost = pl.CostEstimate(
        flops=3 * N * D,                       # sub, mul, add per element
        transcendentals=0,
        bytes_accessed=2 * N * D * itemsize + N * 4,
    )

    out3 = pl.pallas_call(
        _make_kernel(inv_hw),
        out_shape=jax.ShapeDtypeStruct((N, 1, _LANES), jnp.float32),
        grid_spec=pltpu.PrefetchScalarGridSpec(
            num_scalar_prefetch=0,
            grid=(N, n_k),
            in_specs=[
                pl.BlockSpec((1, r_tile, _LANES), lambda i, k: (i, k, 0)),
                pl.BlockSpec((1, r_tile, _LANES), lambda i, k: (i, k, 0)),
            ],
            # Output block index depends only on the batch (parallel) axis so
            # the deferred last-step writeback stays correct.
            out_specs=pl.BlockSpec((1, 1, _LANES), lambda i, k: (i, 0, 0)),
            scratch_shapes=[pltpu.VMEM((1, _LANES), jnp.float32)],
        ),
        compiler_params=pltpu.CompilerParams(
            dimension_semantics=("parallel", "arbitrary"),
        ),
        cost_estimate=cost,
    )(q3, g3)

    # All 128 lanes of the output row hold the same per-batch mean.
    return out3[:, 0, :1]


def dualmatch_reference(q, g):
    qg = jnp.sum(
        (q.astype(jnp.float32) - g.astype(jnp.float32)) ** 2, axis=1, keepdims=True
    )                                            # (N, 1, H, W)
    qg = qg.reshape(qg.shape[0], -1)             # (N, H*W)
    return jnp.mean(qg, axis=1, keepdims=True)   # (N, 1)


if __name__ == "__main__":
    key = jax.random.PRNGKey(0)
    kq, kg = jax.random.split(key)
    N, C, H, W = 2, 4, 16, 16
    q = jax.random.normal(kq, (N, C, H, W), dtype=jnp.float32)
    g = jax.random.normal(kg, (N, C, H, W), dtype=jnp.float32)

    out = dualmatch_forward(q, g)
    out = jax.block_until_ready(out)

    ref = dualmatch_reference(q, g)
    assert out.shape == (N, 1)
    assert jnp.allclose(out, ref, rtol=1e-5, atol=1e-5), (out, ref)

    print("KERNEL_OK")
</pallas_src>

<mosaic_0001>
module attributes {stable_mosaic.version = 11 : i64} {
  func.func @kernel(%arg0: i32, %arg1: i32, %arg2: memref<1x8x128xf32, #tpu.memory_space<vmem>>, %arg3: memref<1x8x128xf32, #tpu.memory_space<vmem>>, %arg4: memref<1x1x128xf32, #tpu.memory_space<vmem>>, %arg5: memref<1x128xf32, #tpu.memory_space<vmem>>) attributes {dimension_semantics = [#tpu.dimension_semantics<parallel>, #tpu.dimension_semantics<arbitrary>], iteration_bounds = array<i64: 2, 1>, scalar_prefetch = 0 : i64, scratch_operands = 1 : i64, tpu.core_type = #tpu.core_type<tc>, window_params = [{transform_indices = @transform_0, window_bounds = array<i64: 1, 8, 128>}, {transform_indices = @transform_1, window_bounds = array<i64: 1, 8, 128>}, {transform_indices = @transform_2, window_bounds = array<i64: 1, 1, 128>}]} {
    %c0_i32 = arith.constant 0 : i32
    %0 = arith.cmpi eq, %arg1, %c0_i32 : i32
    %1 = arith.extui %0 : i1 to i32
    %c0_i32_0 = arith.constant 0 : i32
    %2 = arith.cmpi ne, %1, %c0_i32_0 : i32
    scf.if %2 {
      %cst_12 = arith.constant 0.000000e+00 : f32
      %14 = vector.broadcast %cst_12 : f32 to vector<1x128xf32>
      %c0_13 = arith.constant 0 : index
      %c0_14 = arith.constant 0 : index
      %15 = vector.load %arg5[%c0_13, %c0_14] : memref<1x128xf32, #tpu.memory_space<vmem>>, vector<1x128xf32>
      tpu.vector_store %arg5[%c0_13, %c0_14], %14 {strides = array<i32>} : memref<1x128xf32, #tpu.memory_space<vmem>>, vector<1x128xf32>,
    } else {
    }
    %c0 = arith.constant 0 : index
    %c0_1 = arith.constant 0 : index
    %c0_2 = arith.constant 0 : index
    %3 = vector.load %arg2[%c0, %c0_1, %c0_2] : memref<1x8x128xf32, #tpu.memory_space<vmem>>, vector<1x8x128xf32>
    %c0_3 = arith.constant 0 : index
    %c0_4 = arith.constant 0 : index
    %c0_5 = arith.constant 0 : index
    %4 = vector.load %arg3[%c0_3, %c0_4, %c0_5] : memref<1x8x128xf32, #tpu.memory_space<vmem>>, vector<1x8x128xf32>
    %5 = arith.subf %3, %4 : vector<1x8x128xf32>
    %c0_6 = arith.constant 0 : index
    %c0_7 = arith.constant 0 : index
    %6 = vector.load %arg5[%c0_6, %c0_7] : memref<1x128xf32, #tpu.memory_space<vmem>>, vector<1x128xf32>
    %7 = arith.mulf %5, %5 : vector<1x8x128xf32>
    %cst = arith.constant dense<0.000000e+00> : vector<1x128xf32>
    %8 = vector.multi_reduction <add>, %7, %cst [1] : vector<1x8x128xf32> to vector<1x128xf32>
    %9 = arith.addf %6, %8 : vector<1x128xf32>
    %c0_8 = arith.constant 0 : index
    %c0_9 = arith.constant 0 : index
    %10 = vector.load %arg5[%c0_8, %c0_9] : memref<1x128xf32, #tpu.memory_space<vmem>>, vector<1x128xf32>
    tpu.vector_store %arg5[%c0_8, %c0_9], %9 {strides = array<i32>} : memref<1x128xf32, #tpu.memory_space<vmem>>, vector<1x128xf32>,
    %c0_i32_10 = arith.constant 0 : i32
    %11 = arith.cmpi eq, %arg1, %c0_i32_10 : i32
    %12 = arith.extui %11 : i1 to i32
    %c0_i32_11 = arith.constant 0 : i32
    %13 = arith.cmpi ne, %12, %c0_i32_11 : i32
    scf.if %13 {
      %c0_12 = arith.constant 0 : index
      %c0_13 = arith.constant 0 : index
      %14 = vector.load %arg5[%c0_12, %c0_13] : memref<1x128xf32, #tpu.memory_space<vmem>>, vector<1x128xf32>
      %cst_14 = arith.constant dense<0.000000e+00> : vector<1xf32>
      %15 = vector.multi_reduction <add>, %14, %cst_14 [1] : vector<1x128xf32> to vector<1xf32>
      %16 = vector.shape_cast %15 : vector<1xf32> to vector<1x1xf32>
      %cst_15 = arith.constant 3.906250e-03 : f32
      %17 = vector.broadcast %cst_15 : f32 to vector<1x1xf32>
      %18 = arith.mulf %16, %17 : vector<1x1xf32>
      %19 = vector.shape_cast %18 : vector<1x1xf32> to vector<1x1x1xf32>
      %20 = vector.shape_cast %19 : vector<1x1x1xf32> to vector<1x1x1xf32>
      %21 = vector.broadcast %20 : vector<1x1x1xf32> to vector<1x1x128xf32>
      %c0_16 = arith.constant 0 : index
      %c0_17 = arith.constant 0 : index
      %c0_18 = arith.constant 0 : index
      %22 = vector.load %arg4[%c0_16, %c0_17, %c0_18] : memref<1x1x128xf32, #tpu.memory_space<vmem>>, vector<1x1x128xf32>
      tpu.vector_store %arg4[%c0_16, %c0_17, %c0_18], %21 {strides = array<i32>} : memref<1x1x128xf32, #tpu.memory_space<vmem>>, vector<1x1x128xf32>,
    } else {
    }
    return
  }
  func.func @transform_0(%arg0: i32, %arg1: i32) -> (i32, i32, i32) {
    %c0_i32 = arith.constant 0 : i32
    %c0_i32_0 = arith.constant 0 : i32
    return %arg0, %arg1, %c0_i32 : i32, i32, i32
  }
  func.func @transform_1(%arg0: i32, %arg1: i32) -> (i32, i32, i32) {
    %c0_i32 = arith.constant 0 : i32
    %c0_i32_0 = arith.constant 0 : i32
    return %arg0, %arg1, %c0_i32 : i32, i32, i32
  }
  func.func @transform_2(%arg0: i32, %arg1: i32) -> (i32, i32, i32) {
    %c0_i32 = arith.constant 0 : i32
    %c0_i32_0 = arith.constant 0 : i32
    %c0_i32_1 = arith.constant 0 : i32
    return %arg0, %c0_i32, %c0_i32_0 : i32, i32, i32
  }
}

</mosaic_0001>

<bundles_post_ra>
// kernel: tpu_custom_call.1
= control target key start
LH: loop header
LB: loop body
LE: loop exit
PB: predicated region body
PF: predicated region fallthrough
CT: control target
= control target key end

     0   :  { %7 = vsyncpa [#allocation4], 0  ;;  %s731_s0 = inlined_call_operand.hbm [shape: f32[2,8,128], index: 0, kind: input, shape index: {}]   ;;  %s732_s1 = inlined_call_operand.hbm [shape: f32[2,8,128], index: 1, kind: input, shape index: {}]   ;;  %s733_s2 = inlined_call_operand.hbm [shape: f32[2,1,128], index: 2, kind: output, shape index: {}]  }
   0x1   :  { %9 = vsyncpa [#allocation4 + $0x1], 0 }
   0x2   :  { %10 = vsyncpa [#allocation7], 0 }
   0x3   :  { %12 = vsyncpa [#allocation7 + $0x1], 0 }
   0x4   :  { %13 = vsyncpa [#allocation5], 0 }
   0x5   :  { %15 = vsyncpa [#allocation5 + $0x1], 0  ;;  %s602_s9 = smov 0   ;;  %s604_s10 = smov 0  }
   0x6   :  { %s606_s11 = smov 0   ;;  %s608_s12 = smov 0  }
   0x7   :  { %s610_s13 = smov 0   ;;  %s612_s14 = smov 0  }
   0x8 LB: > { %s357_s15 = sadd.s32 4294967295, %s584_s14   ;;  %s358_s16 = sadd.s32 4294967294, %s584_s14   ;;  %s584_s14 = sphi %s612_s14, %s21_s14   ;;  %s580_s13 = sphi %s610_s13, %s742_s13   ;;  %s576_s12 = sphi %s608_s12, %s741_s12   ;;  %s572_s11 = sphi %s606_s11, %s740_s11   ;;  %s568_s10 = sphi %s604_s10, %s739_s10   ;;  %s564_s9 = sphi %s602_s9, %s738_s9  }
   0x9   : > { %s33_s17 = sadd.s32 1, %s580_s13  ;;  %s42_s18 = sadd.s32 1, %s572_s11 }
   0xa   : > { %p35_p0 = scmp.ge.s32.totalorder %s33_s17, 2  ;;  %p49_p1 = scmp.ne.s32.totalorder %s572_s11, %s568_s10 }
   0xb   : > { %p50_p2 = scmp.eq.s32.totalorder %s584_s14, 0  ;;  %p55_p3 = scmp.ne.s32.totalorder %s568_s10, %s564_s9 }
   0xc   : > { %s744_s17 = smov (%p35_p0, %s33_s17), 0  ;;  %p56_p5 = scmp.eq.s32.totalorder %s357_s15, 0 }
   0xd   : > { %p643_p4 = por %p50_p2, %p49_p1  ;;  %s37_s20 = ssub.s32 %s580_s13, %s744_s17 }
   0xe   : > { %p107_p6 = scmp.eq.s32.totalorder %s357_s15, 1  ;;  %p40_p7 = scmp.eq.s32.totalorder %s37_s20, 0 }
   0xf   : > { %p649_p8 = por %p56_p5, %p55_p3  ;;  %p113_p10 = scmp.eq.s32.totalorder %s358_s16, 1 }
  0x10   : > { %p653_p9 = por %p107_p6, %p49_p1  ;;  %p360_p12 = scmp.ge.s32.totalorder %s584_s14, 2 }
  0x11   : > { %s658_s23 = scalar_select %p40_p7, %s572_s11, %s42_s18  }
  0x12   : > { %p660_p11 = por %p113_p10, %p55_p3  ;;  %p387_p13 = scmp.lt.s32.totalorder %s584_s14, 2 }
  0x13   : > { %s133_s25 = sand.u32 1, %s572_s11   ;;  %s362_s27 = sshll.u32 %s580_s13, 3 }
  0x14   : > { %s361_s26 = sshll.u32 %s133_s25, 3  ;;  %s142_s30 = scalar_lea.hbm %s731_s0, %s362_s27 }
  0x15   : > { %s137_s3 = scalar_lea.vmem [#allocation3], %s361_s26  ;;  %s144_s5 = sshll.u32 %s142_s30, 4  ;;  %s145_s5 = int_to_ptr.hbm [resolvable:$true] %s144_s5 }
  0x16   : > { %s146_s4 = sshll.u32 %s137_s3, 4  ;;  %p377_p0 = pnand %p387_p13, %p643_p4  ;;  %s147_s4 = int_to_ptr.vmem [resolvable:$true] %s146_s4 }
  0x17   : > { %p365_p1 = scmp.ge.s32.totalorder %s584_s14, 1  ;;  %p171_p2 = scmp.lt.s32.totalorder %s584_s14, 3 }
  0x18   : > { %s134_s6 = scalar_lea.sflag [#allocation4], %s133_s25  ;;  %s162_s15 = scalar_lea.hbm %s732_s1, %s362_s27 }
  0x19   : > { %379 = dma.hbm_to_vmem [thread:$0]  (!%p377_p0), %s145_s5, 128, %s147_s4, %s134_s6  }
  0x1a   : > { %p172_p3 = pnand %p365_p1, %p171_p2  ;;  %s157_s16 = scalar_lea.vmem [#allocation6], %s361_s26 }
  0x1b   : > { %s166_s18 = sshll.u32 %s157_s16, 4  ;;  %s164_s20 = sshll.u32 %s162_s15, 4  ;;  %s167_s18 = int_to_ptr.vmem [resolvable:$true] %s166_s18  ;;  %s165_s20 = int_to_ptr.hbm [resolvable:$true] %s164_s20 }
  0x1c   : > { %s154_s28 = scalar_lea.sflag [#allocation7], %s133_s25  ;;  %175 = sbr.rel (%p172_p3) target bundleno = 185 (0xb9), region = 28 }
  0x1d   : > { %382 = dma.hbm_to_vmem [thread:$0]  (!%p377_p0), %s165_s20, 128, %s167_s18, %s154_s28  }
  0x1e   : > { %s679_s19 = sand.u32 (!%p172_p3), 1, %s568_s10  }
  0x1f   : > { %s366_s29 = sshll.u32 (!%p172_p3), %s679_s19, 3  ;;  %s178_s30 = scalar_lea.sflag (!%p172_p3), [#allocation4], %s679_s19 }
  0x20   : > { %s181_s3 = scalar_lea.vmem (!%p172_p3), [#allocation3], %s366_s29 }
  0x21   : > { %551 = dma.done.wait (%p649_p8), %s178_s30, 128  }
  0x22   : > { %553 = vsyncadd (%p649_p8), %s178_s30, 4294967168  ;;  %s188_s26 = scalar_lea.sflag [#allocation7], %s679_s19  ;;  %s191_s25 = scalar_lea.vmem [#allocation6], %s366_s29 }
  0x23   : > { %555 = dma.done.wait (%p649_p8), %s188_s26, 128  }
  0x24   : > { %557 = vsyncadd (%p649_p8), %s188_s26, 4294967168  ;;  %v586_v0 = vmov 0.0   ;;  %v222_v1 = vld [vmem:[%s181_s3] sm:$0xff]  ;;  %v223_v2 = vld [vmem:[%s191_s25] sm:$0xff]  ;;  %vm239_vm0 = vcmask 1040384   ;;  %s254_s4 = scalar_lea.hbm %s733_s2, %s576_s12  ;;  %s216_s5 = scalar_lea.vmem [#allocation8], %s679_s19 }
  0x25   : > { %221 = vst [vmem:[#allocation2] sm:$0x1] %v586_v0  ;;  %v224_v3 = vsub.f32 %v222_v1, %v223_v2  ;;  %s256_s6 = sshll.u32 %s216_s5, 4  ;;  %s258_s7 = sshll.u32 %s254_s4, 4  ;;  %s257_s6 = int_to_ptr.vmem [resolvable:$true] %s256_s6  ;;  %s259_s7 = int_to_ptr.hbm [resolvable:$true] %s258_s7 }
  0x26   : > { %s246_s8 = scalar_lea.sflag [#allocation5], %s679_s19  ;;  %s512_s15 = sshra.s32 %s259_s7, 4  ;;  %s513_s15 = int_to_ptr.hbm [resolvable:$true] %s512_s15 }
  0x27   : > { %v226_v4 = vmul.f32 %v224_v3, %v224_v3  ;;  %s514_s16 = scalar_lea.hbm %s513_s15, 1  ;;  %s518_s12 = scalar_lea.hbm %s733_s2, 2 }
  0x28   : > { %p515_p4 = scmp.ne.s32.totalorder %s513_s15, %s514_s16  ;;  %p519_p7 = scmp.lt.s32.totalorder %s513_s15, %s733_s2 }
  0x29   : > { %v227_v5 = vrot.slane %v226_v4, 4  ;;  %p520_p8 = scmp.lt.s32.totalorder %s518_s12, %s514_s16 }
  0x2a   : > { %p516_p5 = pnand %p515_p4, %p653_p9 }
  0x2b   : > { %v228_v6 = vadd.f32 %v227_v5, %v226_v4  ;;  %p521_p10 = por %p520_p8, %p519_p7 }
  0x2c   : > { %v225_v10 = vld [vmem:[#allocation2] sm:$0x1]  ;;  %p517_p6 = pneg %p516_p5 }
  0x2d   : > { %v229_v7 = vrot.slane %v228_v6, 2 }
  0x2e   : > { %p522_p13 = pnand %p521_p10, %p517_p6 }
  0x2f   : > { %v230_v8 = vadd.f32 %v229_v7, %v228_v6 }
  0x31   : > { %v231_v9 = vrot.slane %v230_v8, 1 }
  0x33   : > { %v232_v11 = vadd.f32 %v231_v9, %v230_v8 }
  0x35   : > { %v233_v12 = vadd.f32 %v232_v11, %v225_v10 }
  0x37   : > { %234 = vst [vmem:[#allocation2] sm:$0x1] %v233_v12 }
  0x3e   : > { %v238_v13 = vld [vmem:[#allocation2] sm:$0x1] }
  0x3f   : > { %v240_v14 = vsel %vm239_vm0, %v238_v13, 0.0 }
  0x40   : > { %241 = vadd.xlane.f32.xlu0 %v240_v14 }
  0xb3   : > { %v242_v15 = vpop.xlane.xlu0 %241 }
  0xb4   : > { %v243_v16 = vmul.f32 0.00390625, %v242_v15 }
  0xb6   : > { %244 = vst [vmem:[%s216_s5] sm:$0x1] %v243_v16 }
  0xb7   : > { %525 = shalt.err (!%p522_p13)
}
  0xb8   : > { %374 = dma.vmem_to_hbm [thread:$0]  (%p653_p9), %s257_s6, 16, %s259_s7, %s246_s8  }
  0xb9 PF: > { %s270_s19 = sand.u32 1, %s564_s9   ;;  %p384_p0 = pnand %p360_p12, %p660_p11 }
  0xba   : > { %s271_s30 = scalar_lea.sflag [#allocation5], %s270_s19 }
  0xbb   : > { %p385_p1 = pneg %p384_p0 }
  0xbd   : > { %559 = dma.done.wait (%p385_p1), %s271_s30, 16  }
  0xbe   : > { %561 = vsyncadd (%p385_p1), %s271_s30, 4294967280  ;;  %s21_s14 = sadd.s32 1, %s584_s14   ;;  %s738_s9 = smov %s568_s10 }
  0xbf   : > { %p18_p2 = scmp.ge.s32.totalorder %s21_s14, 4   ;;  %s739_s10 = smov %s572_s11 }
  0xc0   : > { %s740_s11 = smov %s658_s23  ;;  %s741_s12 = smov %s580_s13 }
  0xc1   : > { %s742_s13 = smov %s744_s17  ;;  %20 = sbr.rel (!%p18_p2) target bundleno = 8 (0x8), region = 94 }
  0xc6   :  { %276 = vsyncpa [#allocation4], 1 }
  0xc7   :  { %278 = vsyncpa [#allocation4 + $0x1], 1 }
  0xc8   :  { %279 = vsyncpa [#allocation7], 1 }
  0xc9   :  { %281 = vsyncpa [#allocation7 + $0x1], 1 }
  0xca   :  { %282 = vsyncpa [#allocation5], 1 }
  0xcb   :  { %284 = vsyncpa [#allocation5 + $0x1], 1 }

</bundles_post_ra>
